<compile_context>
chip_gen: v7x
topology: tpu7x:2x2x1
jax: 0.10.0
libtpu: 0.0.40
codegen_flags: <defaults>
</compile_context>

<pallas_src>
import functools

import numpy as np
import jax
import jax.numpy as jnp
from jax.experimental import pallas as pl
from jax.experimental.pallas import tpu as pltpu


# ---------------------------------------------------------------------------
# Branch 1: w >= h  ->  image[:, :, pad : pad + h]   (plain XLA strided copy)
# ---------------------------------------------------------------------------
def center_crop_sides(image):
    _, H, W = image.shape
    pad = (W - H) // 2
    return image[:, :, pad:pad + H]


# ---------------------------------------------------------------------------
# Branch 2: h > w  ->  zero-pad width sides + antialiased bilinear resize
# ---------------------------------------------------------------------------
def _bilinear_aa_weights(in_size, out_size):
    """Row-stochastic (out_size, in_size) matrix reproducing torchvision's
    antialiased bilinear (triangle) resampling weights
    (aten::_upsample_bilinear2d_aa, align_corners=False)."""
    scale = in_size / out_size
    kscale = max(scale, 1.0)            # antialias: widen filter on downscale
    support = 1.0 * kscale
    mat = np.zeros((out_size, in_size), dtype=np.float32)
    for i in range(out_size):
        center = scale * (i + 0.5)
        xmin = max(int(center - support + 0.5), 0)
        xmax = min(int(center + support + 0.5), in_size)
        idx = np.arange(xmin, xmax, dtype=np.float64)
        w = np.clip(1.0 - np.abs((idx - center + 0.5) / kscale), 0.0, None)
        total = w.sum()
        if total > 0.0:
            w = w / total
        mat[i, xmin:xmax] = w.astype(np.float32)
    return mat


def _pick_tile(dim, candidates=(256, 128)):
    """Largest MXU/lane-aligned tile that exactly divides `dim`; otherwise the
    full extent (full-extent blocks are always layout-legal)."""
    for t in candidates:
        if dim > t and dim % t == 0:
            return t
    return dim


def _resize_kernel(x_ref, awt_ref, ah_ref, o_ref, y_ref, acc_ref, *,
                   C, round_to_int, lo, hi):
    h = pl.program_id(1)

    @pl.when(h == 0)
    def _init():
        acc_ref[...] = jnp.zeros_like(acc_ref)

    tH, W = x_ref.shape[1], x_ref.shape[2]
    t_out = awt_ref.shape[1]
    awt = awt_ref[...]                                         # (W, t_out) f32

    # --- width resize -------------------------------------------------------
    # All channels in one MXU matmul when the row merge is layout-clean
    # (tH a multiple of the 8-row sublane tile); otherwise per channel.
    if tH % 8 == 0 or C == 1:
        x2 = x_ref[...].astype(jnp.float32).reshape(C * tH, W)
        y = jnp.dot(x2, awt, preferred_element_type=jnp.float32)   # (C*tH, t_out)
        for c in range(C):       # repack channel-major rows -> (tH, C*t_out)
            y_ref[:, c * t_out:(c + 1) * t_out] = y[c * tH:(c + 1) * tH, :]
    else:
        for c in range(C):
            y_ref[:, c * t_out:(c + 1) * t_out] = jnp.dot(
                x_ref[c].astype(jnp.float32), awt,
                preferred_element_type=jnp.float32)

    # --- height resize: partial sum over this H tile ------------------------
    # Channels merged into the N dim: single (out, tH) @ (tH, C*t_out) matmul.
    acc_ref[...] += jnp.dot(ah_ref[...], y_ref[...],
                            preferred_element_type=jnp.float32)

    # --- finalize: round/clip (integer images), cast, store -----------------
    @pl.when(h == pl.num_programs(1) - 1)
    def _finalize():
        for c in range(C):
            res = acc_ref[:, c * t_out:(c + 1) * t_out]
            if round_to_int:
                # TODO(synk): jnp.round is round-half-to-even; torch's integer
                # path may differ by 1 LSB on exact halves.
                res = jnp.clip(jnp.round(res), lo, hi)
            o_ref[c] = res.astype(o_ref.dtype)


@functools.lru_cache(maxsize=None)
def _build_pad_and_resize(C, H, W, dtype_name):
    dtype = jnp.dtype(dtype_name)
    pad = (H - W) // 2
    Wp = W + 2 * pad                  # width after F.pad(..., (pad, pad, 0, 0))
    out = W                           # target size (w, w)

    # Separable antialiased-bilinear weights (host numpy, built once per shape).
    a_h = _bilinear_aa_weights(H, out)                    # (out, H)
    a_w = _bilinear_aa_weights(Wp, out)                   # (out, Wp), normalized over Wp
    # Padded columns multiply zeros -> trim AFTER normalization (exact) and
    # pre-transpose so the kernel never transposes A_w.
    a_wt = np.ascontiguousarray(a_w[:, pad:pad + W].T)    # (W, out)

    round_to_int = bool(jnp.issubdtype(dtype, jnp.integer))
    if round_to_int:
        info = jnp.iinfo(dtype)
        lo, hi = float(info.min), float(info.max)
    else:
        lo, hi = 0.0, 0.0

    # Tile choices: lane-dense / MXU-aligned (256-multiples also suit v5e's
    # 128x128 MXU); fall back to the full extent for small images.
    t_out = _pick_tile(out)           # output-column tile (parallel axis)
    t_h = _pick_tile(H)               # H-reduction tile (arbitrary, innermost)
    grid = (out // t_out, H // t_h)

    kernel = functools.partial(_resize_kernel, C=C,
                               round_to_int=round_to_int, lo=lo, hi=hi)

    # TODO(synk): for extreme sizes (W and `out` both >~ 2k) also tile the
    # output rows (`out`) so resident a_h / accumulator blocks stay inside the
    # 32 MiB budget on v7x (64 MiB physical VMEM per TensorCore).
    call = pl.pallas_call(
        kernel,
        out_shape=jax.ShapeDtypeStruct((C, out, out), dtype),
        grid_spec=pltpu.PrefetchScalarGridSpec(
            num_scalar_prefetch=0,
            grid=grid,
            in_specs=[
                # image tile: all channels, one H slab, full (pre-pad) width
                pl.BlockSpec((C, t_h, W), lambda j, h: (0, h, 0)),
                # A_w^T column tile: constant along h -> stays resident
                pl.BlockSpec((W, t_out), lambda j, h: (0, j)),
                # A_h reduction tile
                pl.BlockSpec((out, t_h), lambda j, h: (0, h)),
            ],
            out_specs=pl.BlockSpec((C, out, t_out), lambda j, h: (0, 0, j)),
            scratch_shapes=[
                pltpu.VMEM((t_h, C * t_out), jnp.float32),   # channel-merged y
                pltpu.VMEM((out, C * t_out), jnp.float32),   # f32 accumulator
            ]),
        compiler_params=pltpu.CompilerParams(
            # column tiles are independent -> megacore-parallel on v7x;
            # H is the reduction axis -> arbitrary, innermost.
            dimension_semantics=("parallel", "arbitrary"),
            vmem_limit_bytes=32 * 1024 * 1024),
    )

    a_wt_dev = jnp.asarray(a_wt, dtype=jnp.float32)
    a_h_dev = jnp.asarray(a_h, dtype=jnp.float32)

    @jax.jit
    def run(image):
        return call(image, a_wt_dev, a_h_dev)

    return run


def pad_and_resize(image):
    C, H, W = image.shape
    return _build_pad_and_resize(C, H, W, jnp.dtype(image.dtype).name)(image)


# ---------------------------------------------------------------------------
# Module equivalent
# ---------------------------------------------------------------------------
def center_crop_or_pad_sides(image):
    """JAX/Pallas equivalent of CenterCropOrPadSides.forward (CHW image)."""
    _, h, w = image.shape
    if h > w:
        return pad_and_resize(image)
    return center_crop_sides(image)


if __name__ == "__main__":
    key = jax.random.PRNGKey(0)
    k1, k2 = jax.random.split(key)

    # wide image (w > h): center-crop branch -> (3, 8, 8)
    x_wide = jax.random.normal(k1, (3, 8, 16), dtype=jnp.float32)
    # tall image (h > w): pad + antialiased-resize branch -> (3, 8, 8)
    x_tall = jax.random.normal(k2, (3, 16, 8), dtype=jnp.float32)

    y_wide = jax.block_until_ready(center_crop_or_pad_sides(x_wide))
    y_tall = jax.block_until_ready(center_crop_or_pad_sides(x_tall))

    assert y_wide.shape == (3, 8, 8) and y_wide.dtype == jnp.float32
    assert y_tall.shape == (3, 8, 8) and y_tall.dtype == jnp.float32

    # Crop branch must equal a plain center slice (bit-exact).
    pad_w = (16 - 8) // 2
    np.testing.assert_allclose(np.asarray(y_wide),
                               np.asarray(x_wide[:, :, pad_w:pad_w + 8]),
                               rtol=0, atol=0)

    # Resize branch vs. float64 reference:  A_h @ pad(x) @ A_w^T
    pad_h = (16 - 8) // 2
    xp = np.pad(np.asarray(x_tall, dtype=np.float64),
                ((0, 0), (0, 0), (pad_h, pad_h)))
    a_h_ref = _bilinear_aa_weights(16, 8).astype(np.float64)   # (8, 16)
    a_w_ref = _bilinear_aa_weights(16, 8).astype(np.float64)   # (8, 16) over Wp=16
    ref = np.einsum('oh,chw,pw->cop', a_h_ref, xp, a_w_ref)
    np.testing.assert_allclose(np.asarray(y_tall), ref, rtol=0, atol=2e-2)

    print("KERNEL_OK")
</pallas_src>

<mosaic_0001>
module attributes {stable_mosaic.version = 11 : i64} {
  func.func @_resize_kernel(%arg0: i32, %arg1: i32, %arg2: memref<3x16x8xf32, #tpu.memory_space<vmem>>, %arg3: memref<8x8xf32, #tpu.memory_space<vmem>>, %arg4: memref<8x16xf32, #tpu.memory_space<vmem>>, %arg5: memref<3x8x8xf32, #tpu.memory_space<vmem>>, %arg6: memref<16x24xf32, #tpu.memory_space<vmem>>, %arg7: memref<8x24xf32, #tpu.memory_space<vmem>>) attributes {dimension_semantics = [#tpu.dimension_semantics<parallel>, #tpu.dimension_semantics<arbitrary>], iteration_bounds = array<i64: 1, 1>, scalar_prefetch = 0 : i64, scratch_operands = 2 : i64, tpu.core_type = #tpu.core_type<tc>, window_params = [{transform_indices = @transform_0, window_bounds = array<i64: 3, 16, 8>}, {transform_indices = @transform_1, window_bounds = array<i64: 8, 8>}, {transform_indices = @transform_2, window_bounds = array<i64: 8, 16>}, {transform_indices = @transform_3, window_bounds = array<i64: 3, 8, 8>}]} {
    %c0_i32 = arith.constant 0 : i32
    %0 = arith.cmpi eq, %arg1, %c0_i32 : i32
    %1 = arith.extui %0 : i1 to i32
    %c0_i32_0 = arith.constant 0 : i32
    %2 = arith.cmpi ne, %1, %c0_i32_0 : i32
    scf.if %2 {
      %cst_20 = arith.constant 0.000000e+00 : f32
      %22 = vector.broadcast %cst_20 : f32 to vector<8x24xf32>
      %c0_21 = arith.constant 0 : index
      %c0_22 = arith.constant 0 : index
      %23 = vector.load %arg7[%c0_21, %c0_22] : memref<8x24xf32, #tpu.memory_space<vmem>>, vector<8x24xf32>
      tpu.vector_store %arg7[%c0_21, %c0_22], %22 {strides = array<i32>} : memref<8x24xf32, #tpu.memory_space<vmem>>, vector<8x24xf32>,
    } else {
    }
    %c0 = arith.constant 0 : index
    %c0_1 = arith.constant 0 : index
    %3 = vector.load %arg3[%c0, %c0_1] : memref<8x8xf32, #tpu.memory_space<vmem>>, vector<8x8xf32>
    %c0_2 = arith.constant 0 : index
    %c0_3 = arith.constant 0 : index
    %c0_4 = arith.constant 0 : index
    %4 = vector.load %arg2[%c0_2, %c0_3, %c0_4] : memref<3x16x8xf32, #tpu.memory_space<vmem>>, vector<3x16x8xf32>
    %5 = vector.shape_cast %4 : vector<3x16x8xf32> to vector<48x8xf32>
    %cst = arith.constant dense<0.000000e+00> : vector<48x8xf32>
    %6 = tpu.matmul %5, %3, %cst {dimension_numbers = #tpu.dot_dimension_numbers<[1], [0], [0], [1], [0, 0, 1, 1], [], []>} : vector<48x8xf32>, vector<8x8xf32>, vector<48x8xf32> -> vector<48x8xf32>
    %7 = vector.extract_strided_slice %6 {offsets = [0, 0], sizes = [16, 8], strides = [1, 1]} : vector<48x8xf32> to vector<16x8xf32>
    %c0_5 = arith.constant 0 : index
    %c0_6 = arith.constant 0 : index
    %8 = vector.load %arg6[%c0_5, %c0_6] : memref<16x24xf32, #tpu.memory_space<vmem>>, vector<16x8xf32>
    tpu.vector_store %arg6[%c0_5, %c0_6], %7 {strides = array<i32>} : memref<16x24xf32, #tpu.memory_space<vmem>>, vector<16x8xf32>,
    %9 = vector.extract_strided_slice %6 {offsets = [16, 0], sizes = [16, 8], strides = [1, 1]} : vector<48x8xf32> to vector<16x8xf32>
    %c0_7 = arith.constant 0 : index
    %c8 = arith.constant 8 : index
    %10 = vector.load %arg6[%c0_7, %c8] : memref<16x24xf32, #tpu.memory_space<vmem>>, vector<16x8xf32>
    tpu.vector_store %arg6[%c0_7, %c8], %9 {strides = array<i32>} : memref<16x24xf32, #tpu.memory_space<vmem>>, vector<16x8xf32>,
    %11 = vector.extract_strided_slice %6 {offsets = [32, 0], sizes = [16, 8], strides = [1, 1]} : vector<48x8xf32> to vector<16x8xf32>
    %c0_8 = arith.constant 0 : index
    %c16 = arith.constant 16 : index
    %12 = vector.load %arg6[%c0_8, %c16] : memref<16x24xf32, #tpu.memory_space<vmem>>, vector<16x8xf32>
    tpu.vector_store %arg6[%c0_8, %c16], %11 {strides = array<i32>} : memref<16x24xf32, #tpu.memory_space<vmem>>, vector<16x8xf32>,
    %c0_9 = arith.constant 0 : index
    %c0_10 = arith.constant 0 : index
    %13 = vector.load %arg7[%c0_9, %c0_10] : memref<8x24xf32, #tpu.memory_space<vmem>>, vector<8x24xf32>
    %c0_11 = arith.constant 0 : index
    %c0_12 = arith.constant 0 : index
    %14 = vector.load %arg4[%c0_11, %c0_12] : memref<8x16xf32, #tpu.memory_space<vmem>>, vector<8x16xf32>
    %c0_13 = arith.constant 0 : index
    %c0_14 = arith.constant 0 : index
    %15 = vector.load %arg6[%c0_13, %c0_14] : memref<16x24xf32, #tpu.memory_space<vmem>>, vector<16x24xf32>
    %cst_15 = arith.constant dense<0.000000e+00> : vector<8x24xf32>
    %16 = tpu.matmul %14, %15, %cst_15 {dimension_numbers = #tpu.dot_dimension_numbers<[1], [0], [0], [1], [0, 0, 1, 1], [], []>} : vector<8x16xf32>, vector<16x24xf32>, vector<8x24xf32> -> vector<8x24xf32>
    %17 = arith.addf %13, %16 : vector<8x24xf32>
    %c0_16 = arith.constant 0 : index
    %c0_17 = arith.constant 0 : index
    %18 = vector.load %arg7[%c0_16, %c0_17] : memref<8x24xf32, #tpu.memory_space<vmem>>, vector<8x24xf32>
    tpu.vector_store %arg7[%c0_16, %c0_17], %17 {strides = array<i32>} : memref<8x24xf32, #tpu.memory_space<vmem>>, vector<8x24xf32>,
    %c0_i32_18 = arith.constant 0 : i32
    %19 = arith.cmpi eq, %arg1, %c0_i32_18 : i32
    %20 = arith.extui %19 : i1 to i32
    %c0_i32_19 = arith.constant 0 : i32
    %21 = arith.cmpi ne, %20, %c0_i32_19 : i32
    scf.if %21 {
      %c0_20 = arith.constant 0 : index
      %c0_21 = arith.constant 0 : index
      %22 = vector.load %arg7[%c0_20, %c0_21] : memref<8x24xf32, #tpu.memory_space<vmem>>, vector<8x8xf32>
      %c0_22 = arith.constant 0 : index
      %c0_23 = arith.constant 0 : index
      %c0_24 = arith.constant 0 : index
      %23 = vector.load %arg5[%c0_22, %c0_23, %c0_24] : memref<3x8x8xf32, #tpu.memory_space<vmem>>, vector<1x8x8xf32>
      %24 = vector.shape_cast %23 : vector<1x8x8xf32> to vector<8x8xf32>
      %25 = vector.shape_cast %22 : vector<8x8xf32> to vector<1x8x8xf32>
      tpu.vector_store %arg5[%c0_22, %c0_23, %c0_24], %25 {strides = array<i32>} : memref<3x8x8xf32, #tpu.memory_space<vmem>>, vector<1x8x8xf32>,
      %c0_25 = arith.constant 0 : index
      %c8_26 = arith.constant 8 : index
      %26 = vector.load %arg7[%c0_25, %c8_26] : memref<8x24xf32, #tpu.memory_space<vmem>>, vector<8x8xf32>
      %c1 = arith.constant 1 : index
      %c0_27 = arith.constant 0 : index
      %c0_28 = arith.constant 0 : index
      %27 = vector.load %arg5[%c1, %c0_27, %c0_28] : memref<3x8x8xf32, #tpu.memory_space<vmem>>, vector<1x8x8xf32>
      %28 = vector.shape_cast %27 : vector<1x8x8xf32> to vector<8x8xf32>
      %29 = vector.shape_cast %26 : vector<8x8xf32> to vector<1x8x8xf32>
      tpu.vector_store %arg5[%c1, %c0_27, %c0_28], %29 {strides = array<i32>} : memref<3x8x8xf32, #tpu.memory_space<vmem>>, vector<1x8x8xf32>,
      %c0_29 = arith.constant 0 : index
      %c16_30 = arith.constant 16 : index
      %30 = vector.load %arg7[%c0_29, %c16_30] : memref<8x24xf32, #tpu.memory_space<vmem>>, vector<8x8xf32>
      %c2 = arith.constant 2 : index
      %c0_31 = arith.constant 0 : index
      %c0_32 = arith.constant 0 : index
      %31 = vector.load %arg5[%c2, %c0_31, %c0_32] : memref<3x8x8xf32, #tpu.memory_space<vmem>>, vector<1x8x8xf32>
      %32 = vector.shape_cast %31 : vector<1x8x8xf32> to vector<8x8xf32>
      %33 = vector.shape_cast %30 : vector<8x8xf32> to vector<1x8x8xf32>
      tpu.vector_store %arg5[%c2, %c0_31, %c0_32], %33 {strides = array<i32>} : memref<3x8x8xf32, #tpu.memory_space<vmem>>, vector<1x8x8xf32>,
    } else {
    }
    return
  }
  func.func @transform_0(%arg0: i32, %arg1: i32) -> (i32, i32, i32) {
    %c0_i32 = arith.constant 0 : i32
    %c0_i32_0 = arith.constant 0 : i32
    %c0_i32_1 = arith.constant 0 : i32
    return %c0_i32, %arg1, %c0_i32_0 : i32, i32, i32
  }
  func.func @transform_1(%arg0: i32, %arg1: i32) -> (i32, i32) {
    %c0_i32 = arith.constant 0 : i32
    %c0_i32_0 = arith.constant 0 : i32
    return %c0_i32, %arg0 : i32, i32
  }
  func.func @transform_2(%arg0: i32, %arg1: i32) -> (i32, i32) {
    %c0_i32 = arith.constant 0 : i32
    %c0_i32_0 = arith.constant 0 : i32
    return %c0_i32, %arg1 : i32, i32
  }
  func.func @transform_3(%arg0: i32, %arg1: i32) -> (i32, i32, i32) {
    %c0_i32 = arith.constant 0 : i32
    %c0_i32_0 = arith.constant 0 : i32
    %c0_i32_1 = arith.constant 0 : i32
    return %c0_i32, %c0_i32_0, %arg0 : i32, i32, i32
  }
}

</mosaic_0001>

<bundles_post_ra>
// kernel: run.1
= control target key start
LH: loop header
LB: loop body
LE: loop exit
PB: predicated region body
PF: predicated region fallthrough
CT: control target
= control target key end

     0   :  { %vm28_vm0 = vcmask 64512   ;;  %s436_s0 = inlined_call_operand.vmem [shape: f32[3,16,8], index: 0, kind: input, shape index: {}]   ;;  %s437_s1 = inlined_call_operand.vmem [shape: f32[8,8], index: 1, kind: input, shape index: {}]   ;;  %s438_s2 = inlined_call_operand.vmem [shape: f32[8,16], index: 2, kind: input, shape index: {}]   ;;  %s439_s3 = inlined_call_operand.hbm [shape: f32[3,8,8], index: 3, kind: output, shape index: {}]  }
   0x1   :  { %v21_v0 = vld [vmem:[%s437_s1] sm:$0xff]  ;;  %v23_v3 = vld [vmem:[%s436_s0 + $0x8] sm:$0xff]  ;;  %v24_v5 = vld [vmem:[%s436_s0 + $0x10] sm:$0xff] }
   0x2   :  { %v22_v1 = vld [vmem:[%s436_s0] sm:$0xff]  ;;  %299 = vmatprep.subr.mxu0 %v21_v0  ;;  %320 = vmatprep.subr.mxu1 %v21_v0  ;;  %v27_v4 = vld [vmem:[%s436_s0 + $0x28] sm:$0xff] }
   0x3   :  { %v26_v2 = vld [vmem:[%s436_s0 + $0x20] sm:$0xff]  ;;  %300 = vmatpush3.msra.mxu0 %v21_v0  ;;  %321 = vmatpush3.msra.mxu1 %v21_v0 }
   0x4   :  { %8 = vsyncpa [#allocation5], 0  ;;  %301 = vmatprep.mubr.msk.f32.mxu0 %vm28_vm0, %v22_v1  ;;  %307 = vmatprep.mubr.msk.f32.mxu1 %vm28_vm0, %v26_v2  ;;  %v25_v6 = vld [vmem:[%s436_s0 + $0x18] sm:$0xff]  ;;  %v355_v7 = vmov 0.0|0.0   ;;  %s356_s25 = smov 16   ;;  %s357_s26 = smov 8  }
   0x5   :  { %302 = vmatmul.mubr.msk.f32.vlgmr.msra.gmra.mrb[0].mxu0 %vm28_vm0, %v23_v3  ;;  %308 = vmatmul.mubr.msk.f32.vlgmr.msra.gmra.mrb[0].mxu1 %vm28_vm0, %v27_v4  ;;  %vm19_vm1 = vcmask 195584   ;;  %v358_v14 = vmov 0.0   ;;  %vm359_vm2 = vmmov 0   ;;  %vm152_vm3 = vcmask 130112   ;;  %v167_v22 = vld [vmem:[%s438_s2] sm:$0xff]  ;;  %s360_s28 = smov 112  }
   0x6   :  { %304 = vmatprep.mubr.msk.f32.mxu0 %vm28_vm0, %v24_v5  ;;  %317 = vmatprep.subr.bf16.mxu1 %v355_v7  ;;  %20 = vst.msk [vmem:[#allocation3] sm:$0xff] %vm19_vm1, %v358_v14  ;;  %vm163_vm4 = vcmask 195712   ;;  %vm170_vm5 = vcmask 130048   ;;  %s361_s29 = smov 120   ;;  %s362_s30 = smov [#allocation4]  }
   0x7   :  { %314 = vmatprep.mubr.msk.f32.mxu1 %vm359_vm2, %v358_v14  ;;  %s271_s4 = sshll.u32 %s362_s30, 4  ;;  %s272_s4 = int_to_ptr.vmem [resolvable:$true] %s271_s4 }
   0x8   :  { %s331_s2 = scalar_lea.vmem %s272_s4, 384  ;;  %p336_p1 = scmp.lt.s32.totalorder %s272_s4, %s272_s4 }
   0x9   :  { %305 = vmatmul.mubr.msk.f32.gmra.mrb[2].mxu0 %vm28_vm0, %v25_v6  ;;  %p332_p0 = scmp.ne.s32.totalorder %s272_s4, %s331_s2  ;;  %p337_p2 = scmp.lt.s32.totalorder %s331_s2, %s331_s2 }
   0xb   :  { %p338_p3 = por %p337_p2, %p336_p1 }
   0xd   :  { %v166_v23 = vld [vmem:[#allocation3] sm:$0xff]  ;;  %p339_p4 = pnand %p338_p3, %p332_p0 }
  0xd8   :  { %v303_v8 = vpop.f32.mrb[0].mxu0  ;;  %v309_v9 = vpop.f32.mrb[0].mxu1 }
  0xd9   :  { %143 = vst.msk [vmem:[#allocation2 + $0x8] sm:$0xff] %vm28_vm0, %v303_v8  ;;  %v113_v10 = vpop.f32.mrb[1].mxu0  ;;  %v133_v11 = vpop.f32.mrb[1].mxu1 }
  0xda   :  { %142 = vst.msk [vmem:[#allocation2] sm:$0xff] %vm28_vm0, %v113_v10  ;;  %157 = vrot.lane.b32.xlu1 %v133_v11, %s356_s25 }
  0xdc   :  { %v306_v12 = vpop.f32.mrb[2].mxu0 }
  0xdd   :  { %v123_v13 = vpop.f32.mrb[3].mxu0 }
  0xde   :  { %159 = vrot.lane.b32.xlu1 %v309_v9, %s356_s25  ;;  %146 = vrot.lane.b32.xlu0 %v123_v13, %s357_s26 }
  0xe2   :  { %148 = vrot.lane.b32.xlu0 %v306_v12, %s357_s26 }
 0x14c   :  { %v158_v15 = vpop.permute.xlu1 %157 }
 0x150   :  { %v147_v16 = vpop.permute.xlu0 %146  ;;  %v160_v18 = vpop.permute.xlu1 %159 }
 0x151   :  { %153 = vst.msk [vmem:[#allocation2] sm:$0xff] %vm152_vm3, %v147_v16 }
 0x152   :  { %164 = vst.msk [vmem:[#allocation2] sm:$0xff] %vm163_vm4, %v158_v15 }
 0x154   :  { %v149_v17 = vpop.permute.xlu0 %148 }
 0x155   :  { %154 = vst.msk [vmem:[#allocation2 + $0x8] sm:$0xff] %vm152_vm3, %v149_v17 }
 0x156   :  { %165 = vst.msk [vmem:[#allocation2 + $0x8] sm:$0xff] %vm163_vm4, %v160_v18 }
 0x159   :  { %v168_v19 = vld [vmem:[#allocation2] sm:$0xff] }
 0x15d   :  { %v169_v20 = vld [vmem:[#allocation2 + $0x8] sm:$0xff] }
 0x15e   :  { %v318_v21 = vpack.c.bf16 %v169_v20, %v168_v19 }
 0x160   :  { %319 = vmatpush3.bf16.msra.mxu1 %v318_v21 }
 0x163   :  { %315 = vmatmul.mubr.msk.f32.vlgmr.msra.gmra.mrb[2].mxu1 %vm170_vm5, %v167_v22 }
 0x236   :  { %v240_v24 = vpop.f32.mrb[2].mxu1 }
 0x237   :  { %v244_v25 = vadd.f32 %v240_v24, %v166_v23  ;;  %v316_v26 = vpop.f32.mrb[3].mxu1 }
 0x239   :  { %246 = vst.msk [vmem:[#allocation3] sm:$0xff] %vm19_vm1, %v244_v25 }
 0x240   :  { %v259_v27 = vld [vmem:[#allocation3] sm:$0xff] }
 0x241   :  { %261 = vrot.lane.b32.xlu1 %v259_v27, %s360_s28  ;;  %254 = vrot.lane.b32.xlu0 %v259_v27, %s361_s29  ;;  %251 = vst.msk [vmem:[#allocation4] sm:$0xff] %vm28_vm0, %v259_v27 }
 0x2b3   :  { %v262_v28 = vpop.permute.xlu1 %261  ;;  %v255_v29 = vpop.permute.xlu0 %254 }
 0x2b4   :  { %265 = vst.msk [vmem:[#allocation4 + $0x10] sm:$0xff] %vm28_vm0, %v262_v28  ;;  %258 = vst.msk [vmem:[#allocation4 + $0x8] sm:$0xff] %vm28_vm0, %v255_v29 }
 0x2b5   :  { %342 = shalt.err (!%p339_p4)
}
 0x2b6   :  { %s343_s7 = scalar_lea.hbm %s439_s3, 384 }
 0x2b7   :  { %p344_p5 = scmp.ne.s32.totalorder %s439_s3, %s343_s7  ;;  %p347_p6 = scmp.lt.u32.totalorder %s343_s7, %s439_s3 }
 0x2b9   :  { %p349_p7 = pnand %p347_p6, %p344_p5 }
 0x2bb   :  { %352 = shalt.err (!%p349_p7)
}
 0x2bc   :  { %s363_s12 = smov 128  }
 0x2bd   :  { %277 = dma.vmem_to_hbm [thread:$0]  %s272_s4, 384, %s439_s3, [#allocation5], %s363_s12, %s363_s12, %s357_s26  }
 0x2be   :  { %353 = dma.done.wait [#allocation5], 384  }
 0x2bf   :  { %354 = vsyncadd [#allocation5], 4294966912 }
 0x2c0   :  { %281 = vsyncpa [#allocation5], 1 }

</bundles_post_ra>
